<compile_context>
chip_gen: v5e
topology: v5e:2x2
jax: 0.10.0
libtpu: 0.0.40
codegen_flags: <defaults>
</compile_context>

<pallas_src>
import functools

import jax
import jax.numpy as jnp
import numpy as np
from jax import lax
from jax.experimental import pallas as pl
from jax.experimental.pallas import tpu as pltpu


# ------------------------------ Pallas kernel ------------------------------ #

def _self_attention_kernel(x_ref, wqkv_ref, bqkv_ref, wo_ref, bo_ref,
                           gamma_ref, o_ref, *, ch, row_block, matmul_dtype):
    """Fused non-local self-attention for one batch element, (c, n) layout.

    x_ref:     (1, c, n)      channels x pixels (n = w*h)
    wqkv_ref:  (3*ch+1, c)    [wq; wk; wv; 0] fused 1x1-conv weights
    bqkv_ref:  (3*ch+1, 1)    [bq; bk; bv; 1] fused biases (last row -> ones in v_aug)
    wo_ref:    (c, ch)        output 1x1-conv weight
    bo_ref:    (c, 1)         output bias
    gamma_ref: (1,) f32       residual scale (SMEM, scalar path)
    o_ref:     (1, c, n)
    """
    x = x_ref[0]                                                    # (c, n) f32
    n = x.shape[-1]
    gamma = gamma_ref[0]

    # One MXU pass for all three 1x1 convs (plus the ones-row generator).
    qkv = jnp.dot(wqkv_ref[...], x,
                  preferred_element_type=jnp.float32) + bqkv_ref[...]   # (3ch+1, n)
    q = qkv[0:ch].astype(matmul_dtype)                             # (ch, n)
    k = qkv[ch:2 * ch].astype(matmul_dtype)                        # (ch, n)
    v_aug = qkv[2 * ch:3 * ch + 1].astype(matmul_dtype)            # (ch+1, n), last row == 1

    # Tile over output columns j: everything downstream of the softmax is
    # column-local, so each block runs through the final store.
    for start in range(0, n, row_block):
        kb = k[:, start:start + row_block]                         # (ch, blk)
        # s[jj, i] = <k_j, q_i> == torch score[i, j]; torch softmax(dim=1)
        # (over the query index i) is therefore a lane-axis softmax here.
        s = lax.dot_general(kb, q, (((0,), (0,)), ((), ())),
                            preferred_element_type=jnp.float32)    # (blk, n)
        p = jnp.exp(s - jnp.max(s, axis=-1, keepdims=True))        # f32, unnormalized

        # Unnormalized p @ v^T; the appended ones-row of v_aug makes row `ch`
        # the softmax denominator, already in lane layout.
        o2 = lax.dot_general(v_aug, p.astype(matmul_dtype),
                             (((1,), (1,)), ((), ())),
                             preferred_element_type=jnp.float32)   # (ch+1, blk)
        o_blk = o2[0:ch] * pl.reciprocal(o2[ch:ch + 1], approx=True)

        # Output 1x1 conv + gamma-residual for this column block.
        a = jnp.dot(wo_ref[...], o_blk,
                    preferred_element_type=jnp.float32) + bo_ref[...]   # (c, blk)
        o_ref[0, :, pl.ds(start, row_block)] = (
            gamma * a + x[:, start:start + row_block]).astype(o_ref.dtype)


# -------------------------------- wrapper ----------------------------------- #

def self_attention_forward(x_nchw, params, *, row_block=128,
                           matmul_dtype=jnp.float32):
    """SelfAttention.forward.  Input/output are NCHW (PyTorch convention)."""
    b, c, w, h = x_nchw.shape
    ch = c // 2
    n = w * h
    if n % row_block != 0:
        row_block = n

    # Free reshape: NCHW is already (b, c, w*h)-contiguous.  No transposes.
    x_cn = x_nchw.reshape(b, c, n)

    # Fuse the three projection convs + ones-row generator into one weight/bias.
    wqkv = jnp.concatenate(
        [params["wq"], params["wk"], params["wv"],
         jnp.zeros((1, c), jnp.float32)], axis=0)                      # (3ch+1, c)
    bqkv = jnp.concatenate(
        [params["bq"], params["bk"], params["bv"],
         jnp.ones((1,), jnp.float32)]).reshape(3 * ch + 1, 1)          # (3ch+1, 1)
    wo = params["wo"]                                                  # (c, ch)
    bo = params["bo"].reshape(c, 1)

    kernel = functools.partial(_self_attention_kernel, ch=ch,
                               row_block=row_block, matmul_dtype=matmul_dtype)

    out_cn = pl.pallas_call(
        kernel,
        out_shape=jax.ShapeDtypeStruct((b, c, n), jnp.float32),
        grid_spec=pltpu.PrefetchScalarGridSpec(
            num_scalar_prefetch=0,
            grid=(b,),
            in_specs=[
                pl.BlockSpec((1, c, n), lambda i: (i, 0, 0)),          # x
                pl.BlockSpec((3 * ch + 1, c), lambda i: (0, 0)),       # wqkv
                pl.BlockSpec((3 * ch + 1, 1), lambda i: (0, 0)),       # bqkv
                pl.BlockSpec((c, ch), lambda i: (0, 0)),               # wo
                pl.BlockSpec((c, 1), lambda i: (0, 0)),                # bo
                pl.BlockSpec(memory_space=pltpu.MemorySpace.SMEM),     # gamma
            ],
            out_specs=pl.BlockSpec((1, c, n), lambda i: (i, 0, 0)),
        ),
        compiler_params=pltpu.CompilerParams(
            dimension_semantics=("parallel",)),
    )(x_cn, wqkv, bqkv, wo, bo, params["gamma"])

    return out_cn.reshape(b, c, w, h)


# ------------------------------ param init --------------------------------- #

def init_params(key, in_channels, gamma_value=0.5):
    """PyTorch-style init for the four 1x1 convs; gamma is the residual scale.

    nn.Parameter default for gamma is 0.0 (identity output); we use a nonzero
    value in the test so the attention path is actually exercised.
    """
    c = in_channels
    ch = c // 2
    ks = jax.random.split(key, 8)

    def conv_init(kw, kb, cin, cout):
        bound = 1.0 / np.sqrt(cin)   # Conv2d(1x1) default kaiming-uniform bound
        wgt = jax.random.uniform(kw, (cout, cin), jnp.float32, -bound, bound)
        bia = jax.random.uniform(kb, (cout,), jnp.float32, -bound, bound)
        return wgt, bia

    wq, bq = conv_init(ks[0], ks[1], c, ch)
    wk, bk = conv_init(ks[2], ks[3], c, ch)
    wv, bv = conv_init(ks[4], ks[5], c, ch)
    wo, bo = conv_init(ks[6], ks[7], ch, c)
    return dict(wq=wq, bq=bq, wk=wk, bk=bk, wv=wv, bv=bv, wo=wo, bo=bo,
                gamma=jnp.full((1,), gamma_value, jnp.float32))


# ------------------------------ pure-JAX reference -------------------------- #

def reference_forward(x, params):
    """Direct transcription of the PyTorch forward (NCHW, softmax over dim=1)."""
    b, c, w, h = x.shape
    n = w * h
    xf = x.reshape(b, c, n)
    q = jnp.einsum("dc,bcn->bdn", params["wq"], xf) + params["bq"][None, :, None]
    k = jnp.einsum("dc,bcn->bdn", params["wk"], xf) + params["bk"][None, :, None]
    v = jnp.einsum("dc,bcn->bdn", params["wv"], xf) + params["bv"][None, :, None]
    score = jnp.einsum("bdi,bdj->bij", q, k)          # torch: bmm(q^T, k)
    p = jax.nn.softmax(score, axis=1)                 # torch: softmax(dim=1)
    o = jnp.einsum("bdi,bij->bdj", v, p)              # torch: bmm(v, score)
    a = jnp.einsum("ed,bdn->ben", params["wo"], o) + params["bo"][None, :, None]
    return params["gamma"][0] * a.reshape(b, c, w, h) + x


# ---------------------------------- main ------------------------------------ #

if __name__ == "__main__":
    # Small config consistent with SelfAttention(in_channels=32) on a 16x16 map.
    B, C, W, H = 2, 32, 16, 16

    root = jax.random.PRNGKey(0)
    kx, kp = jax.random.split(root)
    x = jax.random.normal(kx, (B, C, W, H), jnp.float32)       # NCHW input
    params = init_params(kp, C, gamma_value=0.5)

    fwd = jax.jit(self_attention_forward)
    out = jax.block_until_ready(fwd(x, params))

    ref = jax.block_until_ready(reference_forward(x, params))
    assert out.shape == (B, C, W, H), out.shape
    np.testing.assert_allclose(np.asarray(out), np.asarray(ref), rtol=2e-3, atol=2e-3)

    print("KERNEL_OK")
</pallas_src>

<mosaic_0001>
module attributes {stable_mosaic.version = 11 : i64} {
  func.func @_self_attention_kernel(%arg0: i32, %arg1: memref<1x32x256xf32, #tpu.memory_space<vmem>>, %arg2: memref<49x32xf32, #tpu.memory_space<vmem>>, %arg3: memref<49x1xf32, #tpu.memory_space<vmem>>, %arg4: memref<32x16xf32, #tpu.memory_space<vmem>>, %arg5: memref<32x1xf32, #tpu.memory_space<vmem>>, %arg6: memref<1xf32, #tpu.memory_space<smem>>, %arg7: memref<1x32x256xf32, #tpu.memory_space<vmem>>) attributes {dimension_semantics = [#tpu.dimension_semantics<parallel>], iteration_bounds = array<i64: 2>, scalar_prefetch = 0 : i64, scratch_operands = 0 : i64, tpu.core_type = #tpu.core_type<tc>, window_params = [{transform_indices = @transform_0, window_bounds = array<i64: 1, 32, 256>}, {pipeline_mode = #tpu.pipeline_mode<synchronous>, transform_indices = @transform_1, window_bounds = array<i64: 49, 32>}, {pipeline_mode = #tpu.pipeline_mode<synchronous>, transform_indices = @transform_2, window_bounds = array<i64: 49, 1>}, {pipeline_mode = #tpu.pipeline_mode<synchronous>, transform_indices = @transform_3, window_bounds = array<i64: 32, 16>}, {pipeline_mode = #tpu.pipeline_mode<synchronous>, transform_indices = @transform_4, window_bounds = array<i64: 32, 1>}, {transform_indices = @transform_5, window_bounds = array<i64: 1>}, {transform_indices = @transform_6, window_bounds = array<i64: 1, 32, 256>}]} {
    %c0 = arith.constant 0 : index
    %c0_0 = arith.constant 0 : index
    %c0_1 = arith.constant 0 : index
    %0 = vector.load %arg1[%c0, %c0_0, %c0_1] : memref<1x32x256xf32, #tpu.memory_space<vmem>>, vector<1x32x256xf32>
    %1 = vector.shape_cast %0 : vector<1x32x256xf32> to vector<32x256xf32>
    %c0_2 = arith.constant 0 : index
    %2 = memref.load %arg6[%c0_2] : memref<1xf32, #tpu.memory_space<smem>>
    %c0_3 = arith.constant 0 : index
    %c0_4 = arith.constant 0 : index
    %3 = vector.load %arg2[%c0_3, %c0_4] : memref<49x32xf32, #tpu.memory_space<vmem>>, vector<49x32xf32>
    %cst = arith.constant dense<0.000000e+00> : vector<49x256xf32>
    %4 = tpu.matmul %3, %1, %cst {dimension_numbers = #tpu.dot_dimension_numbers<[1], [0], [0], [1], [0, 0, 1, 1], [], []>} : vector<49x32xf32>, vector<32x256xf32>, vector<49x256xf32> -> vector<49x256xf32>
    %c0_5 = arith.constant 0 : index
    %c0_6 = arith.constant 0 : index
    %5 = vector.load %arg3[%c0_5, %c0_6] : memref<49x1xf32, #tpu.memory_space<vmem>>, vector<49x1xf32>
    %6 = vector.broadcast %5 : vector<49x1xf32> to vector<49x256xf32>
    %7 = arith.addf %4, %6 : vector<49x256xf32>
    %8 = vector.extract_strided_slice %7 {offsets = [0, 0], sizes = [16, 256], strides = [1, 1]} : vector<49x256xf32> to vector<16x256xf32>
    %9 = vector.extract_strided_slice %7 {offsets = [16, 0], sizes = [16, 256], strides = [1, 1]} : vector<49x256xf32> to vector<16x256xf32>
    %10 = vector.extract_strided_slice %7 {offsets = [32, 0], sizes = [17, 256], strides = [1, 1]} : vector<49x256xf32> to vector<17x256xf32>
    %11 = vector.extract_strided_slice %9 {offsets = [0, 0], sizes = [16, 128], strides = [1, 1]} : vector<16x256xf32> to vector<16x128xf32>
    %cst_7 = arith.constant dense<0.000000e+00> : vector<128x256xf32>
    %12 = tpu.matmul %11, %8, %cst_7 {dimension_numbers = #tpu.dot_dimension_numbers<[0], [0], [1], [1], [0, 1, 1, 1], [], []>} : vector<16x128xf32>, vector<16x256xf32>, vector<128x256xf32> -> vector<128x256xf32>
    %cst_8 = arith.constant dense<0xFF800000> : vector<128xf32>
    %13 = vector.multi_reduction <maximumf>, %12, %cst_8 [1] : vector<128x256xf32> to vector<128xf32>
    %14 = vector.shape_cast %13 : vector<128xf32> to vector<128x1xf32>
    %15 = vector.broadcast %14 : vector<128x1xf32> to vector<128x256xf32>
    %16 = arith.subf %12, %15 : vector<128x256xf32>
    %17 = math.exp %16 : vector<128x256xf32>
    %cst_9 = arith.constant dense<0.000000e+00> : vector<17x128xf32>
    %18 = tpu.matmul %10, %17, %cst_9 {dimension_numbers = #tpu.dot_dimension_numbers<[1], [1], [0], [0], [0, 0, 1, 0], [], []>} : vector<17x256xf32>, vector<128x256xf32>, vector<17x128xf32> -> vector<17x128xf32>
    %19 = vector.extract_strided_slice %18 {offsets = [0, 0], sizes = [16, 128], strides = [1, 1]} : vector<17x128xf32> to vector<16x128xf32>
    %20 = vector.extract_strided_slice %18 {offsets = [16, 0], sizes = [1, 128], strides = [1, 1]} : vector<17x128xf32> to vector<1x128xf32>
    %21 = tpu.reciprocal %20 {approx = true} : vector<1x128xf32> -> vector<1x128xf32>
    %22 = vector.broadcast %21 : vector<1x128xf32> to vector<16x128xf32>
    %23 = arith.mulf %19, %22 : vector<16x128xf32>
    %c0_10 = arith.constant 0 : index
    %c0_11 = arith.constant 0 : index
    %24 = vector.load %arg4[%c0_10, %c0_11] : memref<32x16xf32, #tpu.memory_space<vmem>>, vector<32x16xf32>
    %cst_12 = arith.constant dense<0.000000e+00> : vector<32x128xf32>
    %25 = tpu.matmul %24, %23, %cst_12 {dimension_numbers = #tpu.dot_dimension_numbers<[1], [0], [0], [1], [0, 0, 1, 1], [], []>} : vector<32x16xf32>, vector<16x128xf32>, vector<32x128xf32> -> vector<32x128xf32>
    %c0_13 = arith.constant 0 : index
    %c0_14 = arith.constant 0 : index
    %26 = vector.load %arg5[%c0_13, %c0_14] : memref<32x1xf32, #tpu.memory_space<vmem>>, vector<32x1xf32>
    %27 = vector.broadcast %26 : vector<32x1xf32> to vector<32x128xf32>
    %28 = arith.addf %25, %27 : vector<32x128xf32>
    %29 = vector.broadcast %2 : f32 to vector<32x128xf32>
    %30 = arith.mulf %29, %28 : vector<32x128xf32>
    %31 = vector.extract_strided_slice %1 {offsets = [0, 0], sizes = [32, 128], strides = [1, 1]} : vector<32x256xf32> to vector<32x128xf32>
    %32 = arith.addf %30, %31 : vector<32x128xf32>
    %c0_15 = arith.constant 0 : index
    %c0_16 = arith.constant 0 : index
    %c0_17 = arith.constant 0 : index
    %33 = vector.load %arg7[%c0_15, %c0_16, %c0_17] : memref<1x32x256xf32, #tpu.memory_space<vmem>>, vector<1x32x128xf32>
    %34 = vector.shape_cast %33 : vector<1x32x128xf32> to vector<32x128xf32>
    %35 = vector.shape_cast %32 : vector<32x128xf32> to vector<1x32x128xf32>
    tpu.vector_store %arg7[%c0_15, %c0_16, %c0_17], %35 {strides = array<i32>} : memref<1x32x256xf32, #tpu.memory_space<vmem>>, vector<1x32x128xf32>,
    %36 = vector.extract_strided_slice %9 {offsets = [0, 128], sizes = [16, 128], strides = [1, 1]} : vector<16x256xf32> to vector<16x128xf32>
    %cst_18 = arith.constant dense<0.000000e+00> : vector<128x256xf32>
    %37 = tpu.matmul %36, %8, %cst_18 {dimension_numbers = #tpu.dot_dimension_numbers<[0], [0], [1], [1], [0, 1, 1, 1], [], []>} : vector<16x128xf32>, vector<16x256xf32>, vector<128x256xf32> -> vector<128x256xf32>
    %cst_19 = arith.constant dense<0xFF800000> : vector<128xf32>
    %38 = vector.multi_reduction <maximumf>, %37, %cst_19 [1] : vector<128x256xf32> to vector<128xf32>
    %39 = vector.shape_cast %38 : vector<128xf32> to vector<128x1xf32>
    %40 = vector.broadcast %39 : vector<128x1xf32> to vector<128x256xf32>
    %41 = arith.subf %37, %40 : vector<128x256xf32>
    %42 = math.exp %41 : vector<128x256xf32>
    %cst_20 = arith.constant dense<0.000000e+00> : vector<17x128xf32>
    %43 = tpu.matmul %10, %42, %cst_20 {dimension_numbers = #tpu.dot_dimension_numbers<[1], [1], [0], [0], [0, 0, 1, 0], [], []>} : vector<17x256xf32>, vector<128x256xf32>, vector<17x128xf32> -> vector<17x128xf32>
    %44 = vector.extract_strided_slice %43 {offsets = [0, 0], sizes = [16, 128], strides = [1, 1]} : vector<17x128xf32> to vector<16x128xf32>
    %45 = vector.extract_strided_slice %43 {offsets = [16, 0], sizes = [1, 128], strides = [1, 1]} : vector<17x128xf32> to vector<1x128xf32>
    %46 = tpu.reciprocal %45 {approx = true} : vector<1x128xf32> -> vector<1x128xf32>
    %47 = vector.broadcast %46 : vector<1x128xf32> to vector<16x128xf32>
    %48 = arith.mulf %44, %47 : vector<16x128xf32>
    %c0_21 = arith.constant 0 : index
    %c0_22 = arith.constant 0 : index
    %49 = vector.load %arg4[%c0_21, %c0_22] : memref<32x16xf32, #tpu.memory_space<vmem>>, vector<32x16xf32>
    %cst_23 = arith.constant dense<0.000000e+00> : vector<32x128xf32>
    %50 = tpu.matmul %49, %48, %cst_23 {dimension_numbers = #tpu.dot_dimension_numbers<[1], [0], [0], [1], [0, 0, 1, 1], [], []>} : vector<32x16xf32>, vector<16x128xf32>, vector<32x128xf32> -> vector<32x128xf32>
    %c0_24 = arith.constant 0 : index
    %c0_25 = arith.constant 0 : index
    %51 = vector.load %arg5[%c0_24, %c0_25] : memref<32x1xf32, #tpu.memory_space<vmem>>, vector<32x1xf32>
    %52 = vector.broadcast %51 : vector<32x1xf32> to vector<32x128xf32>
    %53 = arith.addf %50, %52 : vector<32x128xf32>
    %54 = vector.broadcast %2 : f32 to vector<32x128xf32>
    %55 = arith.mulf %54, %53 : vector<32x128xf32>
    %56 = vector.extract_strided_slice %1 {offsets = [0, 128], sizes = [32, 128], strides = [1, 1]} : vector<32x256xf32> to vector<32x128xf32>
    %57 = arith.addf %55, %56 : vector<32x128xf32>
    %c0_26 = arith.constant 0 : index
    %c0_27 = arith.constant 0 : index
    %c128 = arith.constant 128 : index
    %58 = vector.load %arg7[%c0_26, %c0_27, %c128] : memref<1x32x256xf32, #tpu.memory_space<vmem>>, vector<1x32x128xf32>
    %59 = vector.shape_cast %58 : vector<1x32x128xf32> to vector<32x128xf32>
    %60 = vector.shape_cast %57 : vector<32x128xf32> to vector<1x32x128xf32>
    tpu.vector_store %arg7[%c0_26, %c0_27, %c128], %60 {strides = array<i32>} : memref<1x32x256xf32, #tpu.memory_space<vmem>>, vector<1x32x128xf32>,
    return
  }
  func.func @transform_0(%arg0: i32) -> (i32, i32, i32) {
    %c0_i32 = arith.constant 0 : i32
    %c0_i32_0 = arith.constant 0 : i32
    %c0_i32_1 = arith.constant 0 : i32
    return %arg0, %c0_i32, %c0_i32_0 : i32, i32, i32
  }
  func.func @transform_1(%arg0: i32) -> (i32, i32) {
    %c0_i32 = arith.constant 0 : i32
    %c0_i32_0 = arith.constant 0 : i32
    %c0_i32_1 = arith.constant 0 : i32
    return %c0_i32, %c0_i32_0 : i32, i32
  }
  func.func @transform_2(%arg0: i32) -> (i32, i32) {
    %c0_i32 = arith.constant 0 : i32
    %c0_i32_0 = arith.constant 0 : i32
    %c0_i32_1 = arith.constant 0 : i32
    return %c0_i32, %c0_i32_0 : i32, i32
  }
  func.func @transform_3(%arg0: i32) -> (i32, i32) {
    %c0_i32 = arith.constant 0 : i32
    %c0_i32_0 = arith.constant 0 : i32
    %c0_i32_1 = arith.constant 0 : i32
    return %c0_i32, %c0_i32_0 : i32, i32
  }
  func.func @transform_4(%arg0: i32) -> (i32, i32) {
    %c0_i32 = arith.constant 0 : i32
    %c0_i32_0 = arith.constant 0 : i32
    %c0_i32_1 = arith.constant 0 : i32
    return %c0_i32, %c0_i32_0 : i32, i32
  }
  func.func @transform_5(%arg0: i32) -> i32 {
    %c0_i32 = arith.constant 0 : i32
    %c0_i32_0 = arith.constant 0 : i32
    return %c0_i32 : i32
  }
  func.func @transform_6(%arg0: i32) -> (i32, i32, i32) {
    %c0_i32 = arith.constant 0 : i32
    %c0_i32_0 = arith.constant 0 : i32
    %c0_i32_1 = arith.constant 0 : i32
    return %arg0, %c0_i32, %c0_i32_0 : i32, i32, i32
  }
}

</mosaic_0001>

<bundles_post_ra>
// kernel: self_attention_forward.1
= control target key start
LH: loop header
LB: loop body
LE: loop exit
PB: predicated region body
PF: predicated region fallthrough
CT: control target
= control target key end

     0   :  { %s1751_s23 = smov 0   ;;  %s2299_s0 = inlined_call_operand.vmem [shape: f32[2,32,256], index: 0, kind: input, shape index: {}]   ;;  %s2300_s1 = inlined_call_operand.vmem [shape: f32[49,32], index: 1, kind: input, shape index: {}]   ;;  %s2301_s2 = inlined_call_operand.vmem [shape: f32[49,1], index: 2, kind: input, shape index: {}]   ;;  %s2302_s3 = inlined_call_operand.vmem [shape: f32[32,16], index: 3, kind: input, shape index: {}]   ;;  %s2303_s4 = inlined_call_operand.vmem [shape: f32[32,1], index: 4, kind: input, shape index: {}]   ;;  %s2304_s5 = inlined_call_operand.<no memory space> [shape: f32[1], index: 5, kind: input, shape index: {}]   ;;  %s2305_s6 = inlined_call_operand.vmem [shape: f32[2,32,256], index: 6, kind: output, shape index: {}]  }
   0x1   :  { %11 = sst [smem:[#allocation2]] %s2304_s5 }
   0x2 LB: > { %s1448_s24 = sadd.s32 4294967295, %s1710_s23   ;;  %p1452_p0 = scmp.ge.s32.totalorder %s1710_s23, 1  ;;  %s1710_s23 = sphi %s1751_s23, %s17_s23  }
   0x3   : > { %p213_p1 = scmp.lt.s32.totalorder %s1710_s23, 3 }
   0x5   : > { %p214_p2 = pnand %p1452_p0, %p213_p1 }
   0x7   : > { %217 = sbr.rel (%p214_p2) target bundleno = 1742 (0x6ce), region = 44 }
   0xc   : > { %p243_p3 = scmp.lt.s32.totalorder %s1448_s24, 1  ;;  %v270_v0 = vld [vmem:[%s2301_s2 + $0x8] sm:$0xff]  ;;  %v1712_v1 = vmov 0   ;;  %v271_v2 = vld [vmem:[%s2301_s2 + $0x10] sm:$0xff]  ;;  %v269_v7 = vld [vmem:[%s2301_s2] sm:$0xff]  ;;  %vm311_vm0 = vcmask 261120  }
   0xd   : > { %1562 = vset.pattern.permute.xlu1 %v1712_v1  ;;  %1561 = vset.pattern.permute.xlu0 %v1712_v1  ;;  %v272_v10 = vld [vmem:[%s2301_s2 + $0x18] sm:$0xff]  ;;  %v262_v13 = vld [vmem:[%s2300_s1] sm:$0xff]  ;;  %v263_v14 = vld [vmem:[%s2300_s1 + $0x8] sm:$0xff]  ;;  %vm441_vm1 = vcmask 130048   ;;  %s261_s25 = sld [smem:[#allocation2]] }
   0xe   : > { %s2313_s24 = smov (!%p243_p3, %s1448_s24), 1  ;;  %283 = vperm.xlu1 %1562, %v270_v0   ;;  %288 = vperm.xlu0 %1561, %v271_v2   ;;  %v264_v15 = vld [vmem:[%s2300_s1 + $0x10] sm:$0xff]  ;;  %v265_v16 = vld [vmem:[%s2300_s1 + $0x18] sm:$0xff] }
   0xf   : > { %s1545_s28 = sshll.u32 %s2313_s24, 6  ;;  %v1814_v17 = vld [vmem:[%s2300_s1 + $0x30] sm:$0x1] }
  0x10   : > { %s1775_s7 = scalar_lea.vmem %s2299_s0, %s1545_s28  ;;  %s2210_s27 = scalar_lea.vmem %s2305_s6, %s1545_s28 }
  0x11   : > { %v259_v3 = vld [vmem:[%s1775_s7 + $0x30] sm:$0xff]  ;;  %v260_v4 = vld [vmem:[%s1775_s7 + $0x38] sm:$0xff]  ;;  %v257_v5 = vld [vmem:[%s1775_s7 + $0x20] sm:$0xff] }
  0x12   : > { %345 = vmatpush.msra.mxu0 %v259_v3  ;;  %383 = vmatpush.msra.mxu1 %v260_v4  ;;  %v258_v6 = vld [vmem:[%s1775_s7 + $0x28] sm:$0xff]  ;;  %v255_v8 = vld [vmem:[%s1775_s7 + $0x10] sm:$0xff]  ;;  %v256_v9 = vld [vmem:[%s1775_s7 + $0x18] sm:$0xff] }
  0x13   : > { %1547 = vmatpush.msra.mxu2 %v259_v3  ;;  %v253_v11 = vld [vmem:[%s1775_s7] sm:$0xff]  ;;  %v254_v12 = vld [vmem:[%s1775_s7 + $0x8] sm:$0xff] }
  0x14   : > { %346 = vmatpush.msra.mxu0 %v257_v5  ;;  %384 = vmatpush.msra.mxu1 %v258_v6 }
  0x15   : > { %1548 = vmatpush.msra.mxu2 %v257_v5 }
  0x16   : > { %278 = vperm.xlu1 %1562, %v269_v7   ;;  %293 = vperm.xlu0 %1561, %v272_v10  }
  0x17   : > { %347 = vmatpush.msra.mxu0 %v255_v8  ;;  %385 = vmatpush.msra.mxu1 %v256_v9 }
  0x18   : > { %1549 = vmatpush.msra.mxu2 %v255_v8 }
  0x19   : > { %348 = vmatpush.msra.mxu0 %v253_v11  ;;  %386 = vmatpush.msra.mxu1 %v254_v12 }
  0x1a   : > { %1457 = vmatmul.msk.f32.vlgmr.msra.gmra.mxu0 %vm311_vm0, %v262_v13  ;;  %1464 = vmatmul.msk.f32.vlgmr.msra.gmra.mxu1 %vm311_vm0, %v262_v13 }
  0x1b   : > { %1550 = vmatpush.msra.mxu2 %v253_v11 }
  0x1c   : > { %1463 = vmatmul.msk.f32.vlgmr.msra.gmra.mxu2 %vm311_vm0, %v1814_v17 }
  0x22   : > { %1458 = vmatmul.msk.f32.gmra.mxu0 %vm311_vm0, %v263_v14  ;;  %1465 = vmatmul.msk.f32.gmra.mxu1 %vm311_vm0, %v263_v14 }
  0x2a   : > { %1459 = vmatmul.msk.f32.gmra.mxu0 %vm311_vm0, %v264_v15  ;;  %1466 = vmatmul.msk.f32.gmra.mxu1 %vm311_vm0, %v264_v15 }
  0x32   : > { %1460 = vmatmul.msk.f32.gmra.mxu0 %vm311_vm0, %v265_v16  ;;  %1467 = vmatmul.msk.f32.gmra.mxu1 %vm311_vm0, %v265_v16 }
  0x80   : > { %v284_v18 = vpop.permute.xlu1 %283  ;;  %v1830_v28 = vpop.permute.xlu0 %288 }
  0x88   : > { %v279_v21 = vpop.permute.xlu1 %278  ;;  %v1833_v31 = vpop.permute.xlu0 %293 }
  0x97   : > { %v350_v19 = vpop.f32.mrf.mxu0  ;;  %v388_v20 = vpop.f32.mrf.mxu1 }
  0x98   : > { %v1822_v26 = vadd.f32 %v388_v20, %v279_v21  ;;  %v1825_v27 = vadd.f32 %v350_v19, %v279_v21 }
  0x9f   : > { %v353_v22 = vpop.f32.mrf.mxu0  ;;  %v391_v23 = vpop.f32.mrf.mxu1 }
  0xa0   : > { %v1818_v24 = vadd.f32 %v353_v22, %v284_v18  ;;  %v1820_v25 = vadd.f32 %v391_v23, %v284_v18  ;;  %v1869_v50 = vpop.f32.mrf.mxu2 }
  0xa2   : > { %504 = vmatpush.msrb.mxu2 %v1818_v24  ;;  %569 = vmatpush.msra.mxu3 %v1820_v25 }
  0xa4   : > { %505 = vmatpush.msrb.mxu2 %v1825_v27  ;;  %570 = vmatpush.msra.mxu3 %v1822_v26 }
  0xa7   : > { %v356_v29 = vpop.f32.mrf.mxu0 }
  0xa8   : > { %v357_v30 = vadd.f32 %v356_v29, %v1830_v28  ;;  %v266_v29 = vld [vmem:[%s2300_s1 + $0x20] sm:$0xff] }
  0xa9   : > { %1468 = vmatmul.msk.f32.gmra.mxu1 %vm311_vm0, %v266_v29  ;;  %1461 = vmatmul.msk.f32.gmra.mxu0 %vm311_vm0, %v266_v29 }
  0xaa   : > { %409 = vxpose.xlu2.b32.start [1/2] (short) %v357_v30, 128 }
  0xaf   : > { %v359_v32 = vpop.f32.mrf.mxu0 }
  0xb0   : > { %v360_v33 = vadd.f32 %v359_v32, %v1833_v31 }
  0xb2   : > { %410 = vxpose.xlu2.b32.end [2/2] (short) %v360_v33, 128 }
 0x114   : > { %1563 = vset.pattern.permute.xlu2 %v1712_v1 }
 0x143   : > { %v425_v34 = vpop.trf.xlu2 }
 0x144   : > { %1471 = vmatmul.msk.f32.vlgmr.msrb.gmra.mxu2 %vm441_vm1, %v425_v34  ;;  %1487 = vmatmul.msk.f32.vlgmr.msra.gmra.mxu3 %vm441_vm1, %v425_v34 }
 0x14b   : > { %v426_v35 = vpop.trf.xlu2 }
 0x14c   : > { %1472 = vmatmul.msk.f32.gmra.mxu2 %vm441_vm1, %v426_v35  ;;  %1488 = vmatmul.msk.f32.gmra.mxu3 %vm441_vm1, %v426_v35  ;;  %v267_v35 = vld [vmem:[%s2300_s1 + $0x28] sm:$0xff] }
 0x14d   : > { %1469 = vmatmul.msk.f32.gmra.mxu1 %vm311_vm0, %v267_v35  ;;  %1462 = vmatmul.msk.f32.gmra.mxu0 %vm311_vm0, %v267_v35 }
 0x153   : > { %v427_v36 = vpop.trf.xlu2 }
 0x154   : > { %1473 = vmatmul.msk.f32.gmra.mxu2 %vm441_vm1, %v427_v36  ;;  %1489 = vmatmul.msk.f32.gmra.mxu3 %vm441_vm1, %v427_v36 }
 0x155   : > { %1470 = vmatmul.msk.f32.gmra.mxu1 %vm311_vm0, %v1814_v17 }
 0x15b   : > { %v428_v37 = vpop.trf.xlu2 }
 0x15c   : > { %1474 = vmatmul.msk.f32.gmra.mxu2 %vm441_vm1, %v428_v37  ;;  %1490 = vmatmul.msk.f32.gmra.mxu3 %vm441_vm1, %v428_v37 }
 0x163   : > { %v429_v38 = vpop.trf.xlu2 }
 0x164   : > { %1475 = vmatmul.msk.f32.gmra.mxu2 %vm441_vm1, %v429_v38  ;;  %1491 = vmatmul.msk.f32.gmra.mxu3 %vm441_vm1, %v429_v38 }
 0x16b   : > { %v430_v39 = vpop.trf.xlu2 }
 0x16c   : > { %1476 = vmatmul.msk.f32.gmra.mxu2 %vm441_vm1, %v430_v39  ;;  %1492 = vmatmul.msk.f32.gmra.mxu3 %vm441_vm1, %v430_v39 }
 0x173   : > { %v431_v40 = vpop.trf.xlu2 }
 0x174   : > { %1477 = vmatmul.msk.f32.gmra.mxu2 %vm441_vm1, %v431_v40  ;;  %1493 = vmatmul.msk.f32.gmra.mxu3 %vm441_vm1, %v431_v40 }
 0x17b   : > { %v432_v41 = vpop.trf.xlu2 }
 0x17c   : > { %1478 = vmatmul.msk.f32.gmra.mxu2 %vm441_vm1, %v432_v41  ;;  %1494 = vmatmul.msk.f32.gmra.mxu3 %vm441_vm1, %v432_v41 }
 0x183   : > { %v433_v42 = vpop.trf.xlu2 }
 0x184   : > { %1479 = vmatmul.msk.f32.gmra.mxu2 %vm441_vm1, %v433_v42  ;;  %1495 = vmatmul.msk.f32.gmra.mxu3 %vm441_vm1, %v433_v42 }
 0x18b   : > { %v434_v43 = vpop.trf.xlu2 }
 0x18c   : > { %1480 = vmatmul.msk.f32.gmra.mxu2 %vm441_vm1, %v434_v43  ;;  %1496 = vmatmul.msk.f32.gmra.mxu3 %vm441_vm1, %v434_v43  ;;  %v273_v43 = vld [vmem:[%s2301_s2 + $0x20] sm:$0xff] }
 0x193   : > { %v435_v44 = vpop.trf.xlu2 }
 0x194   : > { %1481 = vmatmul.msk.f32.gmra.mxu2 %vm441_vm1, %v435_v44  ;;  %1497 = vmatmul.msk.f32.gmra.mxu3 %vm441_vm1, %v435_v44  ;;  %v275_v44 = vld [vmem:[%s2301_s2 + $0x30] sm:$0x1] }
 0x19b   : > { %v436_v45 = vpop.trf.xlu2 }
 0x19c   : > { %1482 = vmatmul.msk.f32.gmra.mxu2 %vm441_vm1, %v436_v45  ;;  %1498 = vmatmul.msk.f32.gmra.mxu3 %vm441_vm1, %v436_v45  ;;  %v274_v45 = vld [vmem:[%s2301_s2 + $0x28] sm:$0xff] }
 0x1a3   : > { %v437_v46 = vpop.trf.xlu2 }
 0x1a4   : > { %1483 = vmatmul.msk.f32.gmra.mxu2 %vm441_vm1, %v437_v46  ;;  %1499 = vmatmul.msk.f32.gmra.mxu3 %vm441_vm1, %v437_v46  ;;  %v394_v46 = vpop.f32.mrf.mxu1 }
 0x1ab   : > { %v438_v47 = vpop.trf.xlu2 }
 0x1ac   : > { %1484 = vmatmul.msk.f32.gmra.mxu2 %vm441_vm1, %v438_v47  ;;  %1500 = vmatmul.msk.f32.gmra.mxu3 %vm441_vm1, %v438_v47  ;;  %v395_v47 = vadd.f32 %v394_v46, %v1830_v28 }
 0x1b3   : > { %v439_v48 = vpop.trf.xlu2 }
 0x1b4   : > { %1485 = vmatmul.msk.f32.gmra.mxu2 %vm441_vm1, %v439_v48  ;;  %1501 = vmatmul.msk.f32.gmra.mxu3 %vm441_vm1, %v439_v48  ;;  %v397_v48 = vpop.f32.mrf.mxu1 }
 0x1bb   : > { %v440_v49 = vpop.trf.xlu2 }
 0x1bc   : > { %1486 = vmatmul.msk.f32.gmra.mxu2 %vm441_vm1, %v440_v49  ;;  %1502 = vmatmul.msk.f32.gmra.mxu3 %vm441_vm1, %v440_v49 }
 0x1c7   : > { %v1871_v51 = vpop.f32.mrf.mxu2  ;;  %v1873_v52 = vpop.f32.mrf.mxu3 }
 0x1c8   : > { %v620_v17 = vmax.f32 %v1871_v51, %v1873_v52 }
 0x1cf   : > { %v1875_v53 = vpop.f32.mrf.mxu2  ;;  %v1877_v54 = vpop.f32.mrf.mxu3 }
 0x1d0   : > { %v623_v40 = vmax.f32 %v1875_v53, %v1877_v54 }
 0x1d7   : > { %v1879_v55 = vpop.f32.mrf.mxu2  ;;  %v1881_v56 = vpop.f32.mrf.mxu3 }
 0x1d8   : > { %v626_v42 = vmax.f32 %v1879_v55, %v1881_v56 }
 0x1df   : > { %v1883_v57 = vpop.f32.mrf.mxu2  ;;  %v1885_v58 = vpop.f32.mrf.mxu3 }
 0x1e0   : > { %v629_v38 = vmax.f32 %v1883_v57, %v1885_v58 }
 0x1e7   : > { %v1887_v59 = vpop.f32.mrf.mxu2  ;;  %v1889_v60 = vpop.f32.mrf.mxu3 }
 0x1e8   : > { %v632_v41 = vmax.f32 %v1887_v59, %v1889_v60 }
 0x1ef   : > { %v1891_v61 = vpop.f32.mrf.mxu2  ;;  %v1893_v62 = vpop.f32.mrf.mxu3 }
 0x1f0   : > { %v635_v36 = vmax.f32 %v1891_v61, %v1893_v62 }
 0x1f7   : > { %v1895_v63 = vpop.f32.mrf.mxu2  ;;  %v1897_v0 = vpop.f32.mrf.mxu3 }
 0x1f8   : > { %v638_v39 = vmax.f32 %v1895_v63, %v1897_v0 }
 0x1ff   : > { %v1899_v1 = vpop.f32.mrf.mxu2  ;;  %v1901_v2 = vpop.f32.mrf.mxu3 }
 0x200   : > { %v641_v33 = vmax.f32 %v1899_v1, %v1901_v2 }
 0x207   : > { %v1903_v3 = vpop.f32.mrf.mxu2  ;;  %v1905_v4 = vpop.f32.mrf.mxu3 }
 0x208   : > { %v644_v37 = vmax.f32 %v1903_v3, %v1905_v4 }
 0x20f   : > { %v1907_v5 = vpop.f32.mrf.mxu2  ;;  %v1909_v6 = vpop.f32.mrf.mxu3 }
 0x210   : > { %v647_v14 = vmax.f32 %v1907_v5, %v1909_v6 }
 0x217   : > { %v1911_v7 = vpop.f32.mrf.mxu2  ;;  %v1913_v8 = vpop.f32.mrf.mxu3 }
 0x218   : > { %v650_v19 = vmax.f32 %v1911_v7, %v1913_v8 }
 0x21f   : > { %v1915_v9 = vpop.f32.mrf.mxu2  ;;  %v1917_v10 = vpop.f32.mrf.mxu3 }
 0x220   : > { %v653_v11 = vmax.f32 %v1915_v9, %v1917_v10 }
 0x222   : > { %654 = vmax.xlane.f32.xlu1 %v653_v11 }
 0x227   : > { %v1921_v12 = vpop.f32.mrf.mxu2  ;;  %v1923_v13 = vpop.f32.mrf.mxu3 }
 0x228   : > { %v656_v15 = vmax.f32 %v1921_v12, %v1923_v13 }
 0x22a   : > { %648 = vmax.xlane.f32.xlu1 %v647_v14  ;;  %657 = vmax.xlane.f32.xlu0 %v656_v15  ;;  %v398_v14 = vadd.f32 %v397_v48, %v1833_v31 }
 0x22f   : > { %v1929_v16 = vpop.f32.mrf.mxu2  ;;  %v1931_v18 = vpop.f32.mrf.mxu3 }
 0x230   : > { %v659_v20 = vmax.f32 %v1929_v16, %v1931_v18 }
 0x232   : > { %651 = vmax.xlane.f32.xlu0 %v650_v19  ;;  %660 = vmax.xlane.f32.xlu2 %v659_v20 }
 0x237   : > { %v549_v21 = vpop.f32.mrf.mxu2  ;;  %v614_v22 = vpop.f32.mrf.mxu3 }
 0x238   : > { %v662_v23 = vmax.f32 %v549_v21, %v614_v22 }
 0x23a   : > { %663 = vmax.xlane.f32.xlu1 %v662_v23 }
 0x23f   : > { %v552_v30 = vpop.f32.mrf.mxu2  ;;  %v617_v32 = vpop.f32.mrf.mxu3 }
 0x240   : > { %v665_v34 = vmax.f32 %v552_v30, %v617_v32 }
 0x242   : > { %642 = vmax.xlane.f32.xlu1 %v641_v33  ;;  %666 = vmax.xlane.f32.xlu0 %v665_v34 }
 0x24a   : > { %636 = vmax.xlane.f32.xlu1 %v635_v36  ;;  %645 = vmax.xlane.f32.xlu0 %v644_v37 }
 0x252   : > { %630 = vmax.xlane.f32.xlu1 %v629_v38  ;;  %639 = vmax.xlane.f32.xlu0 %v638_v39 }
 0x25a   : > { %624 = vmax.xlane.f32.xlu1 %v623_v40  ;;  %633 = vmax.xlane.f32.xlu0 %v632_v41 }
 0x262   : > { %627 = vmax.xlane.f32.xlu0 %v626_v42 }
 0x26a   : > { %621 = vmax.xlane.f32.xlu0 %v620_v17 }
 0x273   : > { %298 = vperm.xlu1 %1562, %v273_v43  }
 0x27b   : > { %308 = vperm.xlu1 %1562, %v275_v44  }
 0x27e   : > { %303 = vperm.xlu0 %1561, %v274_v45  }
 0x295   : > { %v655_v49 = vpop.xlane.xlu1 %654 }
 0x29d   : > { %v658_v11 = vpop.xlane.xlu0 %657  ;;  %v1978_v15 = vpop.xlane.xlu1 %648 }
 0x29e   : > { %v692_v41 = vsub.f32 %v1921_v12, %v658_v11 }
 0x2a0   : > { %902 = vxpose.xlu0.b32.start [1/2] (short) %v395_v47, 128 }
 0x2a5   : > { %v652_v19 = vpop.xlane.xlu0 %651  ;;  %v661_v36 = vpop.xlane.xlu2 %660 }
 0x2a6   : > { %v694_v28 = vsub.f32 %v1929_v16, %v661_v36  ;;  %v695_v40 = vsub.f32 %v1931_v18, %v661_v36  ;;  %v748_v16 = vmul.f32 1.442695, %v692_v41  ;;  %v691_v18 = vsub.f32 %v1917_v10, %v655_v49 }
 0x2a7   : > { %v686_v10 = vsub.f32 %v1907_v5, %v1978_v15 }
 0x2a8   : > { %903 = vxpose.xlu0.b32.end [2/2] (short) %v398_v14, 128  ;;  %v752_v42 = vmul.f32 1.442695, %v694_v28  ;;  %v746_v47 = vmul.f32 1.442695, %v691_v18 }
 0x2ad   : > { %v664_v20 = vpop.xlane.xlu1 %663 }
 0x2ae   : > { %v696_v34 = vsub.f32 %v549_v21, %v664_v20  ;;  %v697_v37 = vsub.f32 %v614_v22, %v664_v20  ;;  %v690_v22 = vsub.f32 %v1915_v9, %v655_v49  ;;  %v689_v9 = vsub.f32 %v1913_v8, %v652_v19 }
 0x2af   : > { %v687_v20 = vsub.f32 %v1909_v6, %v1978_v15  ;;  %v736_v8 = vmul.f32 1.442695, %v686_v10 }
 0x2b0   : > { %v756_v39 = vmul.f32 1.442695, %v696_v34  ;;  %v758_v31 = vmul.f32 1.442695, %v697_v37  ;;  %v744_v46 = vmul.f32 1.442695, %v690_v22 }
 0x2b1   : > { %v738_v34 = vmul.f32 1.442695, %v687_v20 }
 0x2b5   : > { %v667_v23 = vpop.xlane.xlu0 %666  ;;  %v643_v14 = vpop.xlane.xlu1 %642 }
 0x2b6   : > { %v698_v29 = vsub.f32 %v552_v30, %v667_v23  ;;  %v699_v33 = vsub.f32 %v617_v32, %v667_v23  ;;  %v693_v30 = vsub.f32 %v1923_v13, %v658_v11  ;;  %v754_v32 = vmul.f32 1.442695, %v695_v40 }
 0x2b7   : > { %v688_v13 = vsub.f32 %v1911_v7, %v652_v19  ;;  %v742_v7 = vmul.f32 1.442695, %v689_v9  ;;  %v682_v6 = vsub.f32 %v1899_v1, %v643_v14  ;;  %v683_v37 = vsub.f32 %v1901_v2, %v643_v14 }
 0x2b8   : > { %v760_v35 = vmul.f32 1.442695, %v698_v29  ;;  %v762_v38 = vmul.f32 1.442695, %v699_v33  ;;  %v750_v43 = vmul.f32 1.442695, %v693_v30 }
 0x2b9   : > { %v740_v49 = vmul.f32 1.442695, %v688_v13  ;;  %v728_v40 = vmul.f32 1.442695, %v682_v6 }
 0x2ba   : > { %1564 = vpow2.f32 %v760_v35 }
 0x2bb   : > { %1566 = vpow2.f32 %v762_v38 }
 0x2bc   : > { %1568 = vpow2.f32 %v756_v39 }
 0x2bd   : > { %1570 = vpow2.f32 %v758_v31  ;;  %v646_v44 = vpop.xlane.xlu0 %645  ;;  %v637_v38 = vpop.xlane.xlu1 %636  ;;  %v730_v31 = vmul.f32 1.442695, %v683_v37 }
 0x2be   : > { %1572 = vpow2.f32 %v752_v42  ;;  %v684_v19 = vsub.f32 %v1903_v3, %v646_v44  ;;  %v685_v5 = vsub.f32 %v1905_v4, %v646_v44  ;;  %v678_v2 = vsub.f32 %v1891_v61, %v637_v38 }
 0x2bf   : > { %1574 = vpow2.f32 %v754_v32 }
 0x2c0   : > { %v1565_v21 = vpop.eup %1564  ;;  %1576 = vpow2.f32 %v748_v16  ;;  %v732_v15 = vmul.f32 1.442695, %v684_v19  ;;  %v734_v28 = vmul.f32 1.442695, %v685_v5  ;;  %v720_v18 = vmul.f32 1.442695, %v678_v2 }
 0x2c1   : > { %v1567_v17 = vpop.eup %1566  ;;  %764 = vmatpush.xpose.msrb.mxu3 %v1565_v21  ;;  %1578 = vpow2.f32 %v750_v43  ;;  %v679_v21 = vsub.f32 %v1893_v62, %v637_v38 }
 0x2c2   : > { %790 = vmatpush.xpose.msrb.mxu1 %v1567_v17  ;;  %v1569_v12 = vpop.eup %1568  ;;  %1580 = vpow2.f32 %v744_v46 }
 0x2c3   : > { %v1571_v45 = vpop.eup %1570  ;;  %1582 = vpow2.f32 %v746_v47  ;;  %v722_v43 = vmul.f32 1.442695, %v679_v21 }
 0x2c4   : > { %v1573_v48 = vpop.eup %1572  ;;  %1584 = vpow2.f32 %v740_v49 }
 0x2c5   : > { %765 = vmatpush.xpose.msrb.mxu3 %v1569_v12  ;;  %v1575_v11 = vpop.eup %1574  ;;  %v640_v33 = vpop.xlane.xlu0 %639  ;;  %1586 = vpow2.f32 %v742_v7 }
 0x2c6   : > { %791 = vmatpush.xpose.msrb.mxu1 %v1571_v45  ;;  %v1577_v23 = vpop.eup %1576  ;;  %1588 = vpow2.f32 %v736_v8  ;;  %v680_v4 = vsub.f32 %v1895_v63, %v640_v33  ;;  %v681_v41 = vsub.f32 %v1897_v0, %v640_v33  ;;  %v631_v16 = vpop.xlane.xlu1 %630 }
 0x2c7   : > { %v1579_v29 = vpop.eup %1578  ;;  %1590 = vpow2.f32 %v738_v34  ;;  %v674_v62 = vsub.f32 %v1883_v57, %v631_v16  ;;  %v675_v13 = vsub.f32 %v1885_v58, %v631_v16 }
 0x2c8   : > { %v1581_v35 = vpop.eup %1580  ;;  %1592 = vpow2.f32 %v732_v15  ;;  %v724_v32 = vmul.f32 1.442695, %v680_v4  ;;  %v726_v17 = vmul.f32 1.442695, %v681_v41  ;;  %v400_v15 = vpop.f32.mrf.mxu1 }
 0x2c9   : > { %766 = vmatpush.xpose.msrb.mxu3 %v1573_v48  ;;  %v1583_v36 = vpop.eup %1582  ;;  %1594 = vpow2.f32 %v734_v28  ;;  %v712_v48 = vmul.f32 1.442695, %v674_v62  ;;  %v2035_v62 = vld [vmem:[%s2302_s3] sm:$0xff] }
 0x2ca   : > { %792 = vmatpush.xpose.msrb.mxu1 %v1575_v11  ;;  %v1585_v39 = vpop.eup %1584  ;;  %1596 = vpow2.f32 %v728_v40  ;;  %v714_v11 = vmul.f32 1.442695, %v675_v13  ;;  %v2045_v13 = vld [vmem:[%s2302_s3 + $0x8] sm:$0xff] }
 0x2cb   : > { %v1587_v3 = vpop.eup %1586  ;;  %1598 = vpow2.f32 %v730_v31 }
 0x2cc   : > { %v1589_v42 = vpop.eup %1588  ;;  %1600 = vpow2.f32 %v724_v32 }
 0x2cd   : > { %767 = vmatpush.xpose.msrb.mxu3 %v1577_v23  ;;  %v634_v1 = vpop.xlane.xlu0 %633  ;;  %v1591_v30 = vpop.eup %1590  ;;  %1602 = vpow2.f32 %v726_v17 }
 0x2ce   : > { %793 = vmatpush.xpose.msrb.mxu1 %v1579_v29  ;;  %v1593_v22 = vpop.eup %1592  ;;  %v676_v0 = vsub.f32 %v1887_v59, %v634_v1  ;;  %v677_v44 = vsub.f32 %v1889_v60, %v634_v1  ;;  %1604 = vpow2.f32 %v720_v18  ;;  %v625_v14 = vpop.xlane.xlu1 %624 }
 0x2cf   : > { %v1595_v63 = vpop.eup %1594  ;;  %1606 = vpow2.f32 %v722_v43  ;;  %v670_v58 = vsub.f32 %v1875_v53, %v625_v14  ;;  %v671_v7 = vsub.f32 %v1877_v54, %v625_v14 }
 0x2d0   : > { %v1597_v61 = vpop.eup %1596  ;;  %v716_v46 = vmul.f32 1.442695, %v676_v0  ;;  %v718_v47 = vmul.f32 1.442695, %v677_v44  ;;  %v403_v4 = vpop.f32.mrf.mxu1 }
 0x2d1   : > { %768 = vmatpush.xpose.msrb.mxu3 %v1581_v35  ;;  %v1599_v12 = vpop.eup %1598  ;;  %v704_v8 = vmul.f32 1.442695, %v670_v58  ;;  %v706_v19 = vmul.f32 1.442695, %v671_v7 }
 0x2d2   : > { %794 = vmatpush.xpose.msrb.mxu1 %v1583_v36  ;;  %v1601_v9 = vpop.eup %1600  ;;  %1608 = vpow2.f32 %v716_v46 }
 0x2d3   : > { %v1603_v59 = vpop.eup %1602  ;;  %1610 = vpow2.f32 %v718_v47 }
 0x2d4   : > { %v1605_v57 = vpop.eup %1604  ;;  %1612 = vpow2.f32 %v712_v48 }
 0x2d5   : > { %769 = vmatpush.xpose.msrb.mxu3 %v1585_v39  ;;  %v628_v45 = vpop.xlane.xlu0 %627  ;;  %v1607_v49 = vpop.eup %1606  ;;  %1614 = vpow2.f32 %v714_v11 }
 0x2d6   : > { %795 = vmatpush.xpose.msrb.mxu1 %v1587_v3  ;;  %v672_v60 = vsub.f32 %v1879_v55, %v628_v45  ;;  %v673_v10 = vsub.f32 %v1881_v56, %v628_v45 }
 0x2d8   : > { %v708_v20 = vmul.f32 1.442695, %v672_v60  ;;  %v710_v23 = vmul.f32 1.442695, %v673_v10  ;;  %v1609_v55 = vpop.eup %1608  ;;  %v406_v2 = vpop.f32.mrf.mxu1 }
 0x2d9   : > { %770 = vmatpush.xpose.msrb.mxu3 %v1589_v42  ;;  %v1611_v33 = vpop.eup %1610 }
 0x2da   : > { %796 = vmatpush.xpose.msrb.mxu1 %v1591_v30  ;;  %1616 = vpow2.f32 %v708_v20  ;;  %v1613_v53 = vpop.eup %1612 }
 0x2db   : > { %1618 = vpow2.f32 %v710_v23  ;;  %v1615_v5 = vpop.eup %1614 }
 0x2dc   : > { %1620 = vpow2.f32 %v704_v8 }
 0x2dd   : > { %771 = vmatpush.xpose.msrb.mxu3 %v1593_v22  ;;  %v622_v29 = vpop.xlane.xlu0 %621  ;;  %1622 = vpow2.f32 %v706_v19 }
 0x2de   : > { %797 = vmatpush.xpose.msrb.mxu1 %v1595_v63  ;;  %v668_v56 = vsub.f32 %v1871_v51, %v622_v29  ;;  %v669_v34 = vsub.f32 %v1873_v52, %v622_v29  ;;  %v362_v52 = vpop.f32.mrf.mxu0 }
 0x2e0   : > { %v700_v35 = vmul.f32 1.442695, %v668_v56  ;;  %v702_v54 = vmul.f32 1.442695, %v669_v34  ;;  %v1617_v36 = vpop.eup %1616 }
 0x2e1   : > { %772 = vmatpush.xpose.msrb.mxu3 %v1597_v61  ;;  %v1619_v6 = vpop.eup %1618 }
 0x2e2   : > { %798 = vmatpush.xpose.msrb.mxu1 %v1599_v12  ;;  %1624 = vpow2.f32 %v700_v35  ;;  %v1621_v51 = vpop.eup %1620 }
 0x2e3   : > { %1626 = vpow2.f32 %v702_v54  ;;  %v1623_v37 = vpop.eup %1622 }
 0x2e5   : > { %773 = vmatpush.xpose.msrb.mxu3 %v1601_v9  ;;  %v299_v38 = vpop.permute.xlu1 %298  ;;  %v2053_v9 = vld [vmem:[%s2302_s3 + $0x10] sm:$0xff] }
 0x2e6   : > { %799 = vmatpush.xpose.msrb.mxu1 %v1603_v59  ;;  %v2010_v3 = vadd.f32 %v362_v52, %v299_v38  ;;  %v2012_v40 = vadd.f32 %v400_v15, %v299_v38  ;;  %v365_v31 = vpop.f32.mrf.mxu0  ;;  %2308 = vst [vmem:[#allocation3_spill] sm:$0xff] %v2053_v9 }
 0x2e8   : > { %v1625_v28 = vpop.eup %1624 }
 0x2e9   : > { %774 = vmatpush.xpose.msrb.mxu3 %v1605_v57  ;;  %v1627_v39 = vpop.eup %1626 }
 0x2ea   : > { %800 = vmatpush.xpose.msrb.mxu1 %v1607_v49 }
 0x2ed   : > { %775 = vmatpush.xpose.msrb.mxu3 %v1609_v55  ;;  %v309_v30 = vpop.permute.xlu1 %308 }
 0x2ee   : > { %801 = vmatpush.xpose.msrb.mxu1 %v1611_v33  ;;  %v2027_v32 = vadd.f32 %v406_v2, %v309_v30 }
 0x2f0   : > { %v304_v41 = vpop.permute.xlu0 %303 }
 0x2f1   : > { %776 = vmatpush.xpose.msrb.mxu3 %v1613_v53  ;;  %v2018_v1 = vadd.f32 %v365_v31, %v304_v41  ;;  %v2020_v42 = vadd.f32 %v403_v4, %v304_v41 }
 0x2f2   : > { %802 = vmatpush.xpose.msrb.mxu1 %v1615_v5 }
 0x2f5   : > { %777 = vmatpush.xpose.msrb.mxu3 %v1617_v36 }
 0x2f6   : > { %803 = vmatpush.xpose.msrb.mxu1 %v1619_v6 }
 0x2f9   : > { %778 = vmatpush.xpose.msrb.mxu3 %v1621_v51 }
 0x2fa   : > { %804 = vmatpush.xpose.msrb.mxu1 %v1623_v37 }
 0x2fd   : > { %779 = vmatpush.xpose.msrb.mxu3 %v1625_v28 }
 0x2fe   : > { %805 = vmatpush.xpose.msrb.mxu1 %v1627_v39 }
 0x300   : > { %780 = vmatmul.f32.vlgmr.msrb.gmra.mxu3 %v2010_v3 }
 0x301   : > { %806 = vmatmul.f32.vlgmr.msrb.gmra.mxu1 %v2012_v40 }
 0x302   : > { %996 = vmatpush.msra.mxu1 %v1818_v24  ;;  %v2025_v24 = vadd.f32 %v1869_v50, %v309_v30 }
 0x304   : > { %997 = vmatpush.msra.mxu1 %v1825_v27 }
 0x308   : > { %783 = vmatmul.f32.gmra.mxu3 %v2018_v1 }
 0x309   : > { %809 = vmatmul.f32.gmra.mxu1 %v2020_v42 }
 0x310   : > { %786 = vmatmul.f32.gmra.mxu3 %v2025_v24 }
 0x311   : > { %812 = vmatmul.f32.gmra.mxu1 %v2027_v32 }
 0x344   : > { %v918_v43 = vpop.trf.xlu0 }
 0x345   : > { %1507 = vmatmul.msk.f32.vlgmr.msra.gmra.mxu1 %vm441_vm1, %v918_v43 }
 0x34c   : > { %v919_v46 = vpop.trf.xlu0 }
 0x34d   : > { %1508 = vmatmul.msk.f32.gmra.mxu1 %vm441_vm1, %v919_v46 }
 0x354   : > { %v920_v47 = vpop.trf.xlu0 }
 0x355   : > { %1509 = vmatmul.msk.f32.gmra.mxu1 %vm441_vm1, %v920_v47 }
 0x37e   : > { %v807_v27 = vpop.f32.mrf.mxu1 }
 0x383   : > { %v781_v21 = vpop.f32.mrf.mxu3 }
 0x384   : > { %v808_v50 = vadd.f32 %v807_v27, %v781_v21 }
 0x386   : > { %v810_v17 = vpop.f32.mrf.mxu1 }
 0x38b   : > { %v784_v22 = vpop.f32.mrf.mxu3 }
 0x38c   : > { %v811_v44 = vadd.f32 %v810_v17, %v784_v22 }
 0x38e   : > { %v813_v63 = vpop.f32.mrf.mxu1 }
 0x393   : > { %v787_v16 = vpop.f32.mrf.mxu3 }
 0x394   : > { %v814_v18 = vadd.f32 %v813_v63, %v787_v16  ;;  %v824_v16 = vld [vmem:[%s2303_s4] sm:$0xff] }
 0x396   : > { %1628 = vrcp.f32 %v814_v18 }
 0x39c   : > { %v1629_v0 = vpop.eup %1628 }
 0x39d   : > { %v817_v61 = vperm.slane %v1629_v0, 0  ;;  %v826_v0 = vld [vmem:[%s2303_s4 + $0x10] sm:$0xff] }
 0x39f   : > { %v819_v12 = vmul.f32 %v817_v61, %v811_v44  ;;  %v818_v45 = vmul.f32 %v817_v61, %v808_v50 }
 0x3a1   : > { %874 = vmatpush.msrb.mxu0 %v819_v12 }
 0x3a3   : > { %875 = vmatpush.msrb.mxu0 %v818_v45 }
 0x3a4   : > { %1503 = vmatmul.msk.f32.vlgmr.msrb.gmra.mxu0 %vm441_vm1, %v2035_v62 }
 0x3a5   : > { %1061 = vmatpush.msra.mxu0 %v1820_v25  ;;  %v921_v25 = vpop.trf.xlu0 }
 0x3a6   : > { %1510 = vmatmul.msk.f32.gmra.mxu1 %vm441_vm1, %v921_v25 }
 0x3a7   : > { %1062 = vmatpush.msra.mxu0 %v1822_v26  ;;  %v2061_v26 = vld [vmem:[%s2302_s3 + $0x18] sm:$0xff] }
 0x3a8   : > { %2309 = vst [vmem:[#allocation4_spill] sm:$0xff] %v2061_v26 }
 0x3ac   : > { %1504 = vmatmul.msk.f32.gmra.mxu0 %vm441_vm1, %v2045_v13 }
 0x3ad   : > { %v922_v59 = vpop.trf.xlu0 }
 0x3ae   : > { %1511 = vmatmul.msk.f32.gmra.mxu1 %vm441_vm1, %v922_v59 }
 0x3b4   : > { %1505 = vmatmul.msk.f32.gmra.mxu0 %vm441_vm1, %v2053_v9 }
 0x3b5   : > { %v923_v48 = vpop.trf.xlu0 }
 0x3b6   : > { %1512 = vmatmul.msk.f32.gmra.mxu1 %vm441_vm1, %v923_v48 }
 0x3bc   : > { %1506 = vmatmul.msk.f32.gmra.mxu0 %vm441_vm1, %v2061_v26 }
 0x3bd   : > { %v924_v60 = vpop.trf.xlu0 }
 0x3be   : > { %1513 = vmatmul.msk.f32.gmra.mxu1 %vm441_vm1, %v924_v60 }
 0x3c2   : > { %v2091_v55 = vpop.f32.mrf.mxu1 }
 0x3c4   : > { %1523 = vmatmul.msk.f32.vlgmr.msra.gmra.mxu0 %vm441_vm1, %v918_v43 }
 0x3c5   : > { %v925_v11 = vpop.trf.xlu0 }
 0x3c6   : > { %1514 = vmatmul.msk.f32.gmra.mxu1 %vm441_vm1, %v925_v11 }
 0x3ca   : > { %v2097_v8 = vpop.f32.mrf.mxu1 }
 0x3cc   : > { %1524 = vmatmul.msk.f32.gmra.mxu0 %vm441_vm1, %v919_v46 }
 0x3cd   : > { %v926_v14 = vpop.trf.xlu0 }
 0x3ce   : > { %1515 = vmatmul.msk.f32.gmra.mxu1 %vm441_vm1, %v926_v14 }
 0x3d2   : > { %v2102_v19 = vpop.f32.mrf.mxu1 }
 0x3d4   : > { %1525 = vmatmul.msk.f32.gmra.mxu0 %vm441_vm1, %v920_v47 }
 0x3d5   : > { %v927_v10 = vpop.trf.xlu0 }
 0x3d6   : > { %1516 = vmatmul.msk.f32.gmra.mxu1 %vm441_vm1, %v927_v10 }
 0x3dc   : > { %1526 = vmatmul.msk.f32.gmra.mxu0 %vm441_vm1, %v921_v25 }
 0x3dd   : > { %v928_v57 = vpop.trf.xlu0 }
 0x3de   : > { %1517 = vmatmul.msk.f32.gmra.mxu1 %vm441_vm1, %v928_v57 }
 0x3e4   : > { %1527 = vmatmul.msk.f32.gmra.mxu0 %vm441_vm1, %v922_v59 }
 0x3e5   : > { %v929_v49 = vpop.trf.xlu0 }
 0x3e6   : > { %1518 = vmatmul.msk.f32.gmra.mxu1 %vm441_vm1, %v929_v49 }
 0x3ec   : > { %1528 = vmatmul.msk.f32.gmra.mxu0 %vm441_vm1, %v923_v48 }
 0x3ed   : > { %v930_v58 = vpop.trf.xlu0 }
 0x3ee   : > { %1519 = vmatmul.msk.f32.gmra.mxu1 %vm441_vm1, %v930_v58 }
 0x3f4   : > { %1529 = vmatmul.msk.f32.gmra.mxu0 %vm441_vm1, %v924_v60 }
 0x3f5   : > { %v931_v20 = vpop.trf.xlu0 }
 0x3f6   : > { %1520 = vmatmul.msk.f32.gmra.mxu1 %vm441_vm1, %v931_v20 }
 0x3fc   : > { %1530 = vmatmul.msk.f32.gmra.mxu0 %vm441_vm1, %v925_v11 }
 0x3fd   : > { %v932_v7 = vpop.trf.xlu0 }
 0x3fe   : > { %1521 = vmatmul.msk.f32.gmra.mxu1 %vm441_vm1, %v932_v7 }
 0x404   : > { %1531 = vmatmul.msk.f32.gmra.mxu0 %vm441_vm1, %v926_v14 }
 0x405   : > { %v933_v29 = vpop.trf.xlu0 }
 0x406   : > { %1522 = vmatmul.msk.f32.gmra.mxu1 %vm441_vm1, %v933_v29 }
 0x40c   : > { %1532 = vmatmul.msk.f32.gmra.mxu0 %vm441_vm1, %v927_v10 }
 0x414   : > { %1533 = vmatmul.msk.f32.gmra.mxu0 %vm441_vm1, %v928_v57 }
 0x41c   : > { %1534 = vmatmul.msk.f32.gmra.mxu0 %vm441_vm1, %v929_v49 }
 0x421   : > { %v2088_v23 = vpop.f32.mrf.mxu0 }
 0x423   : > { %v2109_v5 = vpop.f32.mrf.mxu1 }
 0x424   : > { %1535 = vmatmul.msk.f32.gmra.mxu0 %vm441_vm1, %v930_v58 }
 0x429   : > { %v2094_v33 = vpop.f32.mrf.mxu0 }
 0x42b   : > { %v2113_v54 = vpop.f32.mrf.mxu1 }
 0x42c   : > { %1536 = vmatmul.msk.f32.gmra.mxu0 %vm441_vm1, %v931_v20 }
 0x431   : > { %v2099_v56 = vpop.f32.mrf.mxu0 }
 0x433   : > { %v2117_v6 = vpop.f32.mrf.mxu1 }
 0x434   : > { %1537 = vmatmul.msk.f32.gmra.mxu0 %vm441_vm1, %v932_v7 }
 0x439   : > { %v2104_v34 = vpop.f32.mrf.mxu0 }
 0x43b   : > { %v2121_v15 = vpop.f32.mrf.mxu1 }
 0x43c   : > { %1538 = vmatmul.msk.f32.gmra.mxu0 %vm441_vm1, %v933_v29 }
 0x441   : > { %v2107_v53 = vpop.f32.mrf.mxu0 }
 0x443   : > { %v2127_v38 = vpop.f32.mrf.mxu1 }
 0x449   : > { %v2111_v35 = vpop.f32.mrf.mxu0 }
 0x44a   : > { %v1115_v30 = vmax.f32 %v2097_v8, %v2111_v35 }
 0x44b   : > { %v2135_v31 = vpop.f32.mrf.mxu1 }
 0x451   : > { %v2115_v36 = vpop.f32.mrf.mxu0 }
 0x453   : > { %v2141_v2 = vpop.f32.mrf.mxu1 }
 0x459   : > { %v2119_v51 = vpop.f32.mrf.mxu0 }
 0x45a   : > { %v1121_v4 = vmax.f32 %v2109_v5, %v2119_v51 }
 0x45b   : > { %v2145_v21 = vpop.f32.mrf.mxu1 }
 0x461   : > { %v2123_v37 = vpop.f32.mrf.mxu0 }
 0x463   : > { %v2151_v63 = vpop.f32.mrf.mxu1 }
 0x469   : > { %v2125_v52 = vpop.f32.mrf.mxu0 }
 0x46a   : > { %v1127_v28 = vmax.f32 %v2117_v6, %v2125_v52 }
 0x46b   : > { %v2161_v43 = vpop.f32.mrf.mxu1 }
 0x46c   : > { %1128 = vmax.xlane.f32.xlu2 %v1127_v28  ;;  %v1124_v28 = vmax.f32 %v2113_v54, %v2123_v37 }
 0x471   : > { %v2131_v39 = vpop.f32.mrf.mxu0 }
 0x472   : > { %v1130_v7 = vmax.f32 %v2121_v15, %v2131_v39 }
 0x473   : > { %v2165_v61 = vpop.f32.mrf.mxu1 }
 0x474   : > { %1122 = vmax.xlane.f32.xlu2 %v1121_v4  ;;  %v2199_v4 = vstv %s261_s25 }
 0x479   : > { %v2137_v41 = vpop.f32.mrf.mxu0 }
 0x47a   : > { %v1133_v58 = vmax.f32 %v2127_v38, %v2137_v41 }
 0x47b   : > { %v2171_v45 = vpop.f32.mrf.mxu1 }
 0x47c   : > { %1116 = vmax.xlane.f32.xlu2 %v1115_v30 }
 0x481   : > { %v2143_v27 = vpop.f32.mrf.mxu0 }
 0x482   : > { %v1136_v57 = vmax.f32 %v2135_v31, %v2143_v27 }
 0x483   : > { %v1044_v48 = vpop.f32.mrf.mxu1 }
 0x489   : > { %v2147_v17 = vpop.f32.mrf.mxu0 }
 0x48a   : > { %v1139_v10 = vmax.f32 %v2141_v2, %v2147_v17 }
 0x491   : > { %v2149_v22 = vpop.f32.mrf.mxu0 }
 0x492   : > { %v1142_v14 = vmax.f32 %v2145_v21, %v2149_v22 }
 0x494   : > { %830 = vperm.xlu2 %1563, %v824_v16  }
 0x499   : > { %v2156_v18 = vpop.f32.mrf.mxu0 }
 0x49a   : > { %v1145_v59 = vmax.f32 %v2151_v63, %v2156_v18 }
 0x49c   : > { %840 = vperm.xlu2 %1563, %v826_v0  }
 0x4a1   : > { %v2163_v44 = vpop.f32.mrf.mxu0 }
 0x4a2   : > { %v1148_v47 = vmax.f32 %v2161_v43, %v2163_v44 }
 0x4a4   : > { %1322 = vperm.xlu2 %1563, %v824_v16  }
 0x4a9   : > { %v2167_v50 = vpop.f32.mrf.mxu0 }
 0x4aa   : > { %v1151_v12 = vmax.f32 %v2165_v61, %v2167_v50 }
 0x4ac   : > { %1152 = vmax.xlane.f32.xlu1 %v1151_v12  ;;  %1332 = vperm.xlu2 %1563, %v826_v0   ;;  %v1118_v12 = vmax.f32 %v2102_v19, %v2115_v36 }
 0x4b1   : > { %v2173_v46 = vpop.f32.mrf.mxu0 }
 0x4b2   : > { %v1154_v25 = vmax.f32 %v2171_v45, %v2173_v46 }
 0x4b4   : > { %1149 = vmax.xlane.f32.xlu1 %v1148_v47  ;;  %1155 = vmax.xlane.f32.xlu0 %v1154_v25  ;;  %v1696_v47 = vld [vmem:[%s1775_s7] sm:$0xff] }
 0x4b9   : > { %v1109_v60 = vpop.f32.mrf.mxu0 }
 0x4ba   : > { %v1157_v11 = vmax.f32 %v1044_v48, %v1109_v60 }
 0x4bc   : > { %1146 = vmax.xlane.f32.xlu1 %v1145_v59 }
 0x4c4   : > { %1158 = vmax.xlane.f32.xlu1 %v1157_v11 }
 0x4cc   : > { %1143 = vmax.xlane.f32.xlu1 %v1142_v14  ;;  %v1112_v14 = vmax.f32 %v2091_v55, %v2107_v53 }
 0x4d4   : > { %1140 = vmax.xlane.f32.xlu1 %v1139_v10  ;;  %v1697_v10 = vld [vmem:[%s1775_s7 + $0x20] sm:$0xff] }
 0x4dc   : > { %1137 = vmax.xlane.f32.xlu1 %v1136_v57 }
 0x4df   : > { %v2187_v49 = vpop.xlane.xlu2 %1128 }
 0x4e4   : > { %1134 = vmax.xlane.f32.xlu1 %v1133_v58  ;;  %v825_v58 = vld [vmem:[%s2303_s4 + $0x8] sm:$0xff] }
 0x4e7   : > { %v2191_v20 = vpop.xlane.xlu2 %1122 }
 0x4ec   : > { %1131 = vmax.xlane.f32.xlu1 %v1130_v7 }
 0x4ef   : > { %v2195_v29 = vpop.xlane.xlu2 %1116 }
 0x4f4   : > { %1125 = vmax.xlane.f32.xlu1 %v1124_v28  ;;  %v827_v28 = vld [vmem:[%s2303_s4 + $0x18] sm:$0xff] }
 0x4f7   : > { %v831_v30 = vpop.permute.xlu2 %830 }
 0x4f8   : > { %v878_v16 = vadd.f32 %v2088_v23, %v831_v30 }
 0x4fa   : > { %v890_v0 = vmul.f32 %v2199_v4, %v878_v16 }
 0x4fc   : > { %v894_v25 = vadd.f32 %v1696_v47, %v890_v0  ;;  %1119 = vmax.xlane.f32.xlu1 %v1118_v12 }
 0x4fe   : > { %898 = vst [vmem:[%s2210_s27] sm:$0xff] %v894_v25 }
 0x4ff   : > { %v841_v59 = vpop.permute.xlu2 %840 }
 0x500   : > { %v884_v23 = vadd.f32 %v2099_v56, %v841_v59 }
 0x502   : > { %v892_v11 = vmul.f32 %v2199_v4, %v884_v23 }
 0x504   : > { %v896_v57 = vadd.f32 %v1697_v10, %v892_v11  ;;  %1113 = vmax.xlane.f32.xlu1 %v1112_v14 }
 0x506   : > { %900 = vst [vmem:[%s2210_s27 + $0x20] sm:$0xff] %v896_v57 }
 0x51d   : > { %835 = vperm.xlu1 %1562, %v825_v58  }
 0x51f   : > { %v1153_v7 = vpop.xlane.xlu1 %1152 }
 0x520   : > { %v1186_v14 = vsub.f32 %v2165_v61, %v1153_v7  ;;  %v1187_v57 = vsub.f32 %v2167_v50, %v1153_v7 }
 0x522   : > { %v1244_v9 = vmul.f32 1.442695, %v1186_v14 }
 0x525   : > { %845 = vperm.xlu1 %1562, %v827_v28  }
 0x527   : > { %v1150_v56 = vpop.xlane.xlu1 %1149  ;;  %v1156_v16 = vpop.xlane.xlu0 %1155 }
 0x528   : > { %v1188_v12 = vsub.f32 %v2171_v45, %v1156_v16  ;;  %v1189_v59 = vsub.f32 %v2173_v46, %v1156_v16  ;;  %v1246_v45 = vmul.f32 1.442695, %v1187_v57 }
 0x52a   : > { %v1248_v10 = vmul.f32 1.442695, %v1188_v12  ;;  %v1250_v26 = vmul.f32 1.442695, %v1189_v59 }
 0x52d   : > { %1327 = vperm.xlu1 %1562, %v825_v58  }
 0x52f   : > { %v1147_v30 = vpop.xlane.xlu1 %1146 }
 0x530   : > { %v1182_v16 = vsub.f32 %v2151_v63, %v1147_v30  ;;  %v1183_v7 = vsub.f32 %v2156_v18, %v1147_v30 }
 0x535   : > { %1337 = vperm.xlu1 %1562, %v827_v28   ;;  %v1184_v28 = vsub.f32 %v2161_v43, %v1150_v56 }
 0x537   : > { %v1159_v0 = vpop.xlane.xlu1 %1158  ;;  %v1240_v61 = vmul.f32 1.442695, %v1184_v28 }
 0x538   : > { %v1190_v47 = vsub.f32 %v1044_v48, %v1159_v0  ;;  %v1191_v25 = vsub.f32 %v1109_v60, %v1159_v0  ;;  %v1185_v48 = vsub.f32 %v2163_v44, %v1150_v56  ;;  %v1238_v44 = vmul.f32 1.442695, %v1183_v7 }
 0x53a   : > { %v1252_v23 = vmul.f32 1.442695, %v1190_v47  ;;  %v1254_v11 = vmul.f32 1.442695, %v1191_v25  ;;  %v1242_v50 = vmul.f32 1.442695, %v1185_v48 }
 0x53b   : > { %v1236_v47 = vmul.f32 1.442695, %v1182_v16 }
 0x53c   : > { %1630 = vpow2.f32 %v1252_v23 }
 0x53d   : > { %1632 = vpow2.f32 %v1254_v11 }
 0x53e   : > { %1634 = vpow2.f32 %v1248_v10 }
 0x53f   : > { %v1144_v58 = vpop.xlane.xlu1 %1143  ;;  %1636 = vpow2.f32 %v1250_v26 }
 0x540   : > { %1638 = vpow2.f32 %v1244_v9  ;;  %v1180_v26 = vsub.f32 %v2145_v21, %v1144_v58  ;;  %v1181_v9 = vsub.f32 %v2149_v22, %v1144_v58 }
 0x541   : > { %1640 = vpow2.f32 %v1246_v45 }
 0x542   : > { %v1631_v46 = vpop.eup %1630  ;;  %1642 = vpow2.f32 %v1240_v61  ;;  %v1232_v25 = vmul.f32 1.442695, %v1180_v26  ;;  %v1234_v30 = vmul.f32 1.442695, %v1181_v9 }
 0x543   : > { %v1633_v60 = vpop.eup %1632  ;;  %1256 = vmatpush.xpose.msra.mxu2 %v1631_v46  ;;  %1644 = vpow2.f32 %v1242_v50 }
 0x544   : > { %1282 = vmatpush.xpose.msra.mxu3 %v1633_v60  ;;  %v1635_v0 = vpop.eup %1634  ;;  %1646 = vpow2.f32 %v1236_v47  ;;  %v1171_v47 = vsub.f32 %v2125_v52, %v2187_v49  ;;  %v1167_v52 = vsub.f32 %v2119_v51, %v2191_v20 }
 0x545   : > { %v1637_v12 = vpop.eup %1636  ;;  %1648 = vpow2.f32 %v1238_v44 }
 0x546   : > { %v1639_v56 = vpop.eup %1638  ;;  %1650 = vpow2.f32 %v1232_v25  ;;  %v1214_v25 = vmul.f32 1.442695, %v1171_v47 }
 0x547   : > { %v1141_v43 = vpop.xlane.xlu1 %1140  ;;  %1257 = vmatpush.xpose.msra.mxu2 %v1635_v0  ;;  %v1641_v63 = vpop.eup %1640  ;;  %1652 = vpow2.f32 %v1234_v30 }
 0x548   : > { %1283 = vmatpush.xpose.msra.mxu3 %v1637_v12  ;;  %v1178_v18 = vsub.f32 %v2141_v2, %v1141_v43  ;;  %v1179_v59 = vsub.f32 %v2147_v17, %v1141_v43  ;;  %v1643_v23 = vpop.eup %1642  ;;  %v1170_v43 = vsub.f32 %v2117_v6, %v2187_v49  ;;  %v1166_v6 = vsub.f32 %v2109_v5, %v2191_v20 }
 0x549   : > { %v1645_v11 = vpop.eup %1644  ;;  %v1163_v20 = vsub.f32 %v2111_v35, %v2195_v29 }
 0x54a   : > { %v1228_v14 = vmul.f32 1.442695, %v1178_v18  ;;  %v1230_v10 = vmul.f32 1.442695, %v1179_v59  ;;  %v1647_v58 = vpop.eup %1646 }
 0x54b   : > { %1258 = vmatpush.xpose.msra.mxu2 %v1639_v56  ;;  %v1649_v2 = vpop.eup %1648 }
 0x54c   : > { %1284 = vmatpush.xpose.msra.mxu3 %v1641_v63  ;;  %1654 = vpow2.f32 %v1228_v14  ;;  %v1651_v45 = vpop.eup %1650  ;;  %v1212_v63 = vmul.f32 1.442695, %v1170_v43 }
 0x54d   : > { %1656 = vpow2.f32 %v1230_v10  ;;  %v1653_v48 = vpop.eup %1652 }
 0x54f   : > { %v1138_v21 = vpop.xlane.xlu1 %1137  ;;  %1259 = vmatpush.xpose.msra.mxu2 %v1643_v23 }
 0x550   : > { %v1176_v22 = vsub.f32 %v2135_v31, %v1138_v21  ;;  %1285 = vmatpush.xpose.msra.mxu3 %v1645_v11  ;;  %v1177_v57 = vsub.f32 %v2143_v27, %v1138_v21  ;;  %v1204_v11 = vmul.f32 1.442695, %v1166_v6  ;;  %v1206_v21 = vmul.f32 1.442695, %v1167_v52 }
 0x552   : > { %v1224_v28 = vmul.f32 1.442695, %v1176_v22  ;;  %v1226_v17 = vmul.f32 1.442695, %v1177_v57  ;;  %v1655_v27 = vpop.eup %1654 }
 0x553   : > { %1260 = vmatpush.xpose.msra.mxu2 %v1647_v58  ;;  %v1657_v50 = vpop.eup %1656 }
 0x554   : > { %1286 = vmatpush.xpose.msra.mxu3 %v1649_v2  ;;  %1658 = vpow2.f32 %v1224_v28 }
 0x555   : > { %1660 = vpow2.f32 %v1226_v17  ;;  %v1198_v17 = vmul.f32 1.442695, %v1163_v20 }
 0x557   : > { %v1135_v46 = vpop.xlane.xlu1 %1134  ;;  %1261 = vmatpush.xpose.msra.mxu2 %v1651_v45 }
 0x558   : > { %v1174_v31 = vsub.f32 %v2127_v38, %v1135_v46  ;;  %v1175_v60 = vsub.f32 %v2137_v41, %v1135_v46  ;;  %1287 = vmatpush.xpose.msra.mxu3 %v1653_v48 }
 0x55a   : > { %v1220_v61 = vmul.f32 1.442695, %v1174_v31  ;;  %v1222_v16 = vmul.f32 1.442695, %v1175_v60  ;;  %v1659_v7 = vpop.eup %1658 }
 0x55b   : > { %1262 = vmatpush.xpose.msra.mxu2 %v1655_v27  ;;  %v1661_v0 = vpop.eup %1660 }
 0x55c   : > { %1662 = vpow2.f32 %v1220_v61  ;;  %1288 = vmatpush.xpose.msra.mxu3 %v1657_v50 }
 0x55d   : > { %1664 = vpow2.f32 %v1222_v16 }
 0x55f   : > { %v1132_v12 = vpop.xlane.xlu1 %1131  ;;  %1263 = vmatpush.xpose.msra.mxu2 %v1659_v7  ;;  %v1698_v7 = vld [vmem:[%s1775_s7 + $0x10] sm:$0xff] }
 0x560   : > { %v1172_v38 = vsub.f32 %v2121_v15, %v1132_v12  ;;  %v1173_v41 = vsub.f32 %v2131_v39, %v1132_v12  ;;  %1289 = vmatpush.xpose.msra.mxu3 %v1661_v0 }
 0x562   : > { %v1663_v26 = vpop.eup %1662  ;;  %v1216_v44 = vmul.f32 1.442695, %v1172_v38  ;;  %v1218_v9 = vmul.f32 1.442695, %v1173_v41 }
 0x563   : > { %v1665_v56 = vpop.eup %1664  ;;  %1264 = vmatpush.xpose.msra.mxu2 %v1663_v26 }
 0x564   : > { %1666 = vpow2.f32 %v1216_v44  ;;  %1290 = vmatpush.xpose.msra.mxu3 %v1665_v56 }
 0x565   : > { %1668 = vpow2.f32 %v1218_v9 }
 0x566   : > { %1670 = vpow2.f32 %v1212_v63 }
 0x567   : > { %v1126_v18 = vpop.xlane.xlu1 %1125  ;;  %1672 = vpow2.f32 %v1214_v25  ;;  %v2310_v25 = vld [vmem:[#allocation3_spill] sm:$0xff] }
 0x568   : > { %v1168_v15 = vsub.f32 %v2113_v54, %v1126_v18  ;;  %v1169_v39 = vsub.f32 %v2123_v37, %v1126_v18  ;;  %v1162_v54 = vsub.f32 %v2097_v8, %v2195_v29  ;;  %v2311_v18 = vld [vmem:[#allocation4_spill] sm:$0xff] }
 0x56a   : > { %v1667_v49 = vpop.eup %1666  ;;  %v1208_v30 = vmul.f32 1.442695, %v1168_v15  ;;  %v1210_v59 = vmul.f32 1.442695, %v1169_v39  ;;  %v1196_v28 = vmul.f32 1.442695, %v1162_v54  ;;  %v1323_v15 = vpop.permute.xlu2 %1322 }
 0x56b   : > { %v1669_v23 = vpop.eup %1668  ;;  %1265 = vmatpush.xpose.msra.mxu2 %v1667_v49  ;;  %v1700_v49 = vld [vmem:[%s1775_s7 + $0x8] sm:$0xff] }
 0x56c   : > { %1674 = vpow2.f32 %v1208_v30  ;;  %1291 = vmatpush.xpose.msra.mxu3 %v1669_v23  ;;  %v1671_v14 = vpop.eup %1670 }
 0x56d   : > { %1676 = vpow2.f32 %v1210_v59  ;;  %v1673_v5 = vpop.eup %1672 }
 0x56e   : > { %1678 = vpow2.f32 %v1204_v11  ;;  %v1701_v11 = vld [vmem:[%s1775_s7 + $0x18] sm:$0xff] }
 0x56f   : > { %v1120_v22 = vpop.xlane.xlu1 %1119  ;;  %1266 = vmatpush.xpose.msra.mxu2 %v1671_v14  ;;  %1680 = vpow2.f32 %v1206_v21 }
 0x570   : > { %v1164_v51 = vsub.f32 %v2102_v19, %v1120_v22  ;;  %v1165_v37 = vsub.f32 %v2115_v36, %v1120_v22  ;;  %1292 = vmatpush.xpose.msra.mxu3 %v1673_v5 }
 0x572   : > { %v1675_v10 = vpop.eup %1674  ;;  %v1200_v57 = vmul.f32 1.442695, %v1164_v51  ;;  %v1202_v58 = vmul.f32 1.442695, %v1165_v37  ;;  %v1333_v5 = vpop.permute.xlu2 %1332  ;;  %v1702_v51 = vld [vmem:[%s1775_s7 + $0x28] sm:$0xff] }
 0x573   : > { %v1677_v2 = vpop.eup %1676  ;;  %1267 = vmatpush.xpose.msra.mxu2 %v1675_v10 }
 0x574   : > { %1682 = vpow2.f32 %v1200_v57  ;;  %1293 = vmatpush.xpose.msra.mxu3 %v1677_v2  ;;  %v1679_v8 = vpop.eup %1678  ;;  %v1703_v2 = vld [vmem:[%s1775_s7 + $0x38] sm:$0xff] }
 0x575   : > { %1684 = vpow2.f32 %v1202_v58  ;;  %v1681_v45 = vpop.eup %1680 }
 0x576   : > { %1686 = vpow2.f32 %v1196_v28 }
 0x577   : > { %v1114_v19 = vpop.xlane.xlu1 %1113  ;;  %1268 = vmatpush.xpose.msra.mxu2 %v1679_v8  ;;  %1688 = vpow2.f32 %v1198_v17 }
 0x578   : > { %v1160_v36 = vsub.f32 %v2091_v55, %v1114_v19  ;;  %v1161_v48 = vsub.f32 %v2107_v53, %v1114_v19  ;;  %1294 = vmatpush.xpose.msra.mxu3 %v1681_v45 }
 0x57a   : > { %v1683_v35 = vpop.eup %1682  ;;  %v1192_v29 = vmul.f32 1.442695, %v1160_v36  ;;  %v1194_v46 = vmul.f32 1.442695, %v1161_v48 }
 0x57b   : > { %v1685_v31 = vpop.eup %1684  ;;  %1269 = vmatpush.xpose.msra.mxu2 %v1683_v35 }
 0x57c   : > { %1690 = vpow2.f32 %v1192_v29  ;;  %1295 = vmatpush.xpose.msra.mxu3 %v1685_v31  ;;  %v1687_v60 = vpop.eup %1686 }
 0x57d   : > { %1692 = vpow2.f32 %v1194_v46  ;;  %v1689_v27 = vpop.eup %1688 }
 0x57f   : > { %1270 = vmatpush.xpose.msra.mxu2 %v1687_v60 }
 0x580   : > { %1296 = vmatpush.xpose.msra.mxu3 %v1689_v27 }
 0x582   : > { %v1691_v61 = vpop.eup %1690 }
 0x583   : > { %v1693_v55 = vpop.eup %1692  ;;  %1271 = vmatpush.xpose.msra.mxu2 %v1691_v61 }
 0x584   : > { %1297 = vmatpush.xpose.msra.mxu3 %v1693_v55 }
 0x586   : > { %1272 = vmatmul.f32.vlgmr.msra.gmra.mxu2 %v2010_v3 }
 0x587   : > { %1298 = vmatmul.f32.vlgmr.msra.gmra.mxu3 %v2012_v40 }
 0x58e   : > { %1275 = vmatmul.f32.gmra.mxu2 %v2018_v1  ;;  %v1699_v1 = vld [vmem:[%s1775_s7 + $0x30] sm:$0xff] }
 0x58f   : > { %1301 = vmatmul.f32.gmra.mxu3 %v2020_v42  ;;  %v836_v53 = vpop.permute.xlu1 %835 }
 0x590   : > { %v881_v16 = vadd.f32 %v2094_v33, %v836_v53 }
 0x592   : > { %v891_v50 = vmul.f32 %v2199_v4, %v881_v16 }
 0x594   : > { %v895_v0 = vadd.f32 %v1698_v7, %v891_v50 }
 0x596   : > { %899 = vst [vmem:[%s2210_s27 + $0x10] sm:$0xff] %v895_v0  ;;  %1278 = vmatmul.f32.gmra.mxu2 %v2025_v24 }
 0x597   : > { %1304 = vmatmul.f32.gmra.mxu3 %v2027_v32  ;;  %v846_v3 = vpop.permute.xlu1 %845 }
 0x598   : > { %v887_v40 = vadd.f32 %v2104_v34, %v846_v3 }
 0x59a   : > { %v893_v12 = vmul.f32 %v2199_v4, %v887_v40 }
 0x59c   : > { %v897_v43 = vadd.f32 %v1699_v1, %v893_v12 }
 0x59e   : > { %901 = vst [vmem:[%s2210_s27 + $0x30] sm:$0xff] %v897_v43 }
 0x609   : > { %v1273_v42 = vpop.f32.mrf.mxu2 }
 0x60a   : > { %v1299_v38 = vpop.f32.mrf.mxu3 }
 0x60b   : > { %v1300_v56 = vadd.f32 %v1299_v38, %v1273_v42 }
 0x611   : > { %v1276_v33 = vpop.f32.mrf.mxu2 }
 0x612   : > { %v1302_v41 = vpop.f32.mrf.mxu3 }
 0x613   : > { %v1303_v24 = vadd.f32 %v1302_v41, %v1276_v33 }
 0x619   : > { %v1279_v47 = vpop.f32.mrf.mxu2 }
 0x61a   : > { %v1305_v26 = vpop.f32.mrf.mxu3 }
 0x61b   : > { %v1306_v44 = vadd.f32 %v1305_v26, %v1279_v47 }
 0x61d   : > { %1694 = vrcp.f32 %v1306_v44 }
 0x623   : > { %v1695_v9 = vpop.eup %1694 }
 0x624   : > { %v1309_v32 = vperm.slane %v1695_v9, 0 }
 0x626   : > { %v1311_v34 = vmul.f32 %v1309_v32, %v1303_v24  ;;  %v1310_v63 = vmul.f32 %v1309_v32, %v1300_v56 }
 0x628   : > { %1366 = vmatpush.msrb.mxu2 %v1311_v34 }
 0x62a   : > { %1367 = vmatpush.msrb.mxu2 %v1310_v63 }
 0x62b   : > { %1539 = vmatmul.msk.f32.vlgmr.msrb.gmra.mxu2 %vm441_vm1, %v2035_v62  ;;  %v1328_v62 = vpop.permute.xlu1 %1327 }
 0x633   : > { %1540 = vmatmul.msk.f32.gmra.mxu2 %vm441_vm1, %v2045_v13  ;;  %v1338_v20 = vpop.permute.xlu1 %1337 }
 0x63b   : > { %1541 = vmatmul.msk.f32.gmra.mxu2 %vm441_vm1, %v2310_v25 }
 0x643   : > { %1542 = vmatmul.msk.f32.gmra.mxu2 %vm441_vm1, %v2311_v18 }
 0x6ae   : > { %v1369_v6 = vpop.f32.mrf.mxu2 }
 0x6af   : > { %v1370_v39 = vadd.f32 %v1369_v6, %v1323_v15 }
 0x6b1   : > { %v1381_v52 = vmul.f32 %v1370_v39, %v2199_v4 }
 0x6b3   : > { %v1385_v30 = vadd.f32 %v1700_v49, %v1381_v52 }
 0x6b5   : > { %1389 = vst [vmem:[%s2210_s27 + $0x8] sm:$0xff] %v1385_v30 }
 0x6b6   : > { %v1372_v59 = vpop.f32.mrf.mxu2 }
 0x6b7   : > { %v1373_v13 = vadd.f32 %v1372_v59, %v1328_v62 }
 0x6b9   : > { %v1382_v23 = vmul.f32 %v1373_v13, %v2199_v4 }
 0x6bb   : > { %v1386_v21 = vadd.f32 %v1701_v11, %v1382_v23 }
 0x6bd   : > { %1390 = vst [vmem:[%s2210_s27 + $0x18] sm:$0xff] %v1386_v21 }
 0x6be   : > { %v1375_v14 = vpop.f32.mrf.mxu2 }
 0x6bf   : > { %v1376_v22 = vadd.f32 %v1375_v14, %v1333_v5 }
 0x6c1   : > { %v1383_v54 = vmul.f32 %v1376_v22, %v2199_v4 }
 0x6c3   : > { %v1387_v37 = vadd.f32 %v1702_v51, %v1383_v54 }
 0x6c5   : > { %1391 = vst [vmem:[%s2210_s27 + $0x28] sm:$0xff] %v1387_v37 }
 0x6c6   : > { %v1378_v10 = vpop.f32.mrf.mxu2 }
 0x6c7   : > { %v1379_v57 = vadd.f32 %v1378_v10, %v1338_v20 }
 0x6c9   : > { %v1384_v58 = vmul.f32 %v1379_v57, %v2199_v4 }
 0x6cb   : > { %v1388_v28 = vadd.f32 %v1703_v2, %v1384_v58 }
 0x6cd   : > { %1392 = vst [vmem:[%s2210_s27 + $0x38] sm:$0xff] %v1388_v28 }
 0x6ce PF: > { %s17_s23 = sadd.s32 1, %s1710_s23  }
 0x6cf   : > { %p14_p4 = scmp.ge.s32.totalorder %s17_s23, 4  }
 0x6d1   :  { %16 = sbr.rel (!%p14_p4) target bundleno = 2 (0x2), region = 74 }

</bundles_post_ra>
